<compile_context>
chip_gen: v5e
topology: v5e:2x2
jax: 0.10.0
libtpu: 0.0.40
codegen_flags: <defaults>
</compile_context>

<pallas_src>
import functools

import jax
import jax.numpy as jnp
from jax.experimental import pallas as pl
from jax.experimental.pallas import tpu as pltpu


def _label_smoothing_kernel(x_ref, t_ref, o_ref, *, num_classes, smoothing,
                            total_rows, tile_rows, chunk):
    i = pl.program_id(0)
    n_tiles = pl.num_programs(0)

    confidence = 1.0 - smoothing
    # Matches reference; guard only avoids a Python ZeroDivisionError at trace.
    off_value = (smoothing / (num_classes - 1)) if num_classes > 1 else 0.0

    tb = tile_rows
    c = num_classes
    t = t_ref[...]                                      # (tb, 1) int32

    if chunk is None:
        # Small-C path: straightforward vectorized reductions on the block.
        x = x_ref[...].astype(jnp.float32)              # (tb, c)
        m = jnp.max(x, axis=1, keepdims=True)           # (tb, 1)
        sum_exp = jnp.sum(jnp.exp(x - m), axis=1, keepdims=True)
        sum_x = jnp.sum(x, axis=1, keepdims=True)
        col = jax.lax.broadcasted_iota(jnp.int32, (tb, c), 1)
        x_t = jnp.sum(jnp.where(col == t, x, 0.0), axis=1, keepdims=True)
    else:
        # Large-C path: pass 1 = row max; pass 2 = fused chunked reduction
        # carrying (sum_exp, sum_x, x_t), so the block streams ~2x not 4-5x.
        m = jnp.max(x_ref[...], axis=1, keepdims=True).astype(jnp.float32)
        n_chunks = c // chunk

        def body(j, carry):
            se, sx, xt = carry
            start = pl.multiple_of(j * chunk, chunk)
            xc = x_ref[:, pl.ds(start, chunk)].astype(jnp.float32)
            se = se + jnp.sum(jnp.exp(xc - m), axis=1, keepdims=True)
            sx = sx + jnp.sum(xc, axis=1, keepdims=True)
            col = start + jax.lax.broadcasted_iota(jnp.int32, (tb, chunk), 1)
            xt = xt + jnp.sum(jnp.where(col == t, xc, 0.0),
                              axis=1, keepdims=True)
            return se, sx, xt

        zeros = jnp.zeros((tb, 1), jnp.float32)
        sum_exp, sum_x, x_t = jax.lax.fori_loop(
            0, n_chunks, body, (zeros, zeros, zeros),
            unroll=min(n_chunks, 8))

    lse = jnp.log(sum_exp)                              # (tb, 1)
    z_t = x_t - m                                       # (tb, 1)
    sum_z = sum_x - jnp.float32(c) * m                  # (tb, 1)

    # loss_row = -[(conf - off)*(z_t - lse) + off*(sum_z - C*lse)]
    per_row = -((confidence - off_value) * (z_t - lse)
                + off_value * (sum_z - jnp.float32(c) * lse))      # (tb, 1)

    if total_rows % tile_rows == 0:
        # No padded rows anywhere: no masking needed on any tile.
        o_ref[...] = jnp.sum(per_row, axis=0, keepdims=True).reshape(1, 1, 1)
    else:
        @pl.when(i < n_tiles - 1)
        def _full_tile():
            o_ref[...] = jnp.sum(per_row, axis=0,
                                 keepdims=True).reshape(1, 1, 1)

        @pl.when(i == n_tiles - 1)
        def _tail_tile():
            # Garbage rows of the padded last tile may hold Inf/NaN; a select
            # (NOT arithmetic masking) discards them safely before the sum.
            row = (i * tile_rows
                   + jax.lax.broadcasted_iota(jnp.int32, (tb, 1), 0))
            masked = jnp.where(row < total_rows, per_row, 0.0)
            o_ref[...] = jnp.sum(masked, axis=0,
                                 keepdims=True).reshape(1, 1, 1)


def _sublane_multiple(dtype):
    # f32 -> 8, bf16 -> 16, int8/fp8 -> 32 (packed-dtype sublane tiling).
    return max(8, 32 // jnp.dtype(dtype).itemsize)


def label_smoothing_loss(x, target, num_classes, smoothing=0.1,
                         tile_rows=None):
    """x: (B, C) float logits; target: (B,) int class indices. Returns scalar."""
    b, c = x.shape
    assert c == num_classes
    t2d = target.astype(jnp.int32).reshape(b, 1)

    sub = _sublane_multiple(x.dtype)
    if tile_rows is None:
        # Byte-based block sizing: ~8 MiB of logits per block (fits 2x
        # double-buffered + temporaries inside 48 MiB scoped VMEM on all of
        # v5e / v6e / v7x), rows rounded to the dtype sublane multiple.
        bytes_per_elem = jnp.dtype(x.dtype).itemsize
        target_tile_bytes = 8 * 1024 * 1024
        tb = max(1, target_tile_bytes // max(1, c * bytes_per_elem))
        tb = min(tb, b)
        if tb < b:
            tb = max(sub, (tb // sub) * sub)
    else:
        tb = max(1, min(int(tile_rows), b))

    n_tiles = pl.cdiv(b, tb)

    # Fused chunked class reduction only pays off for larger C.
    chunk = 512 if (c >= 1024 and c % 512 == 0) else None
    # TODO(synk): for vocab-scale C (>=64K) add a class-chunk grid axis with an
    # online-logsumexp carry so each block stays <= ~8 MiB on v7x.

    kernel = functools.partial(
        _label_smoothing_kernel,
        num_classes=c,
        smoothing=float(smoothing),
        total_rows=b,
        tile_rows=tb,
        chunk=chunk,
    )

    partials = pl.pallas_call(
        kernel,
        out_shape=jax.ShapeDtypeStruct((n_tiles, 1, 1), jnp.float32),
        grid_spec=pltpu.PrefetchScalarGridSpec(
            num_scalar_prefetch=0,
            grid=(n_tiles,),
            in_specs=[
                pl.BlockSpec((tb, c), lambda i: (i, 0)),
                pl.BlockSpec((tb, 1), lambda i: (i, 0)),
            ],
            out_specs=pl.BlockSpec((1, 1, 1), lambda i: (i, 0, 0)),
        ),
        compiler_params=pltpu.CompilerParams(
            # Per-tile partial sums -> no carried state -> batch axis can be
            # sharded across both v7x TensorCores.
            dimension_semantics=("parallel",),
            vmem_limit_bytes=48 * 1024 * 1024,
        ),
    )(x, t2d)

    return jnp.sum(partials) / jnp.float32(b)


def _reference(x, target, num_classes, smoothing=0.1):
    confidence = 1.0 - smoothing
    one_hot = jax.nn.one_hot(target, num_classes, dtype=jnp.float32)
    smooth = (one_hot * confidence
              + (1.0 - one_hot) * smoothing / (num_classes - 1))
    logprobs = jax.nn.log_softmax(x.astype(jnp.float32), axis=1)
    return -(smooth * logprobs).sum(axis=1).mean()


if __name__ == "__main__":
    key = jax.random.PRNGKey(0)
    k1, k2, k3, k4 = jax.random.split(key, 4)

    # 1) Module-scale single-tile case.
    b1, c1 = 8, 16
    x1 = jax.random.normal(k1, (b1, c1), dtype=jnp.float32)
    t1 = jax.random.randint(k2, (b1,), 0, c1, dtype=jnp.int32)
    out1 = label_smoothing_loss(x1, t1, c1, smoothing=0.1)
    jax.block_until_ready(out1)
    ref1 = _reference(x1, t1, c1, smoothing=0.1)
    assert jnp.allclose(out1, ref1, atol=1e-5, rtol=1e-5), (out1, ref1)

    # 2) Multi-tile parallel grid with masked partial last tile.
    b2, c2 = 20, 16
    x2 = jax.random.normal(k2, (b2, c2), dtype=jnp.float32)
    t2 = jax.random.randint(k3, (b2,), 0, c2, dtype=jnp.int32)
    out2 = label_smoothing_loss(x2, t2, c2, smoothing=0.1, tile_rows=8)
    jax.block_until_ready(out2)
    ref2 = _reference(x2, t2, c2, smoothing=0.1)
    assert jnp.allclose(out2, ref2, atol=1e-5, rtol=1e-5), (out2, ref2)

    # 3) Larger-C case exercising the fused chunked reduction + partial tile.
    b3, c3 = 24, 2048
    x3 = jax.random.normal(k3, (b3, c3), dtype=jnp.float32)
    t3 = jax.random.randint(k4, (b3,), 0, c3, dtype=jnp.int32)
    out3 = label_smoothing_loss(x3, t3, c3, smoothing=0.1, tile_rows=16)
    jax.block_until_ready(out3)
    ref3 = _reference(x3, t3, c3, smoothing=0.1)
    assert jnp.allclose(out3, ref3, atol=1e-4, rtol=1e-5), (out3, ref3)

    print("KERNEL_OK")
</pallas_src>

<mosaic_0001>
module attributes {stable_mosaic.version = 11 : i64} {
  func.func @_label_smoothing_kernel(%arg0: i32, %arg1: memref<8x16xf32, #tpu.memory_space<vmem>>, %arg2: memref<8x1xi32, #tpu.memory_space<vmem>>, %arg3: memref<1x1x1xf32, #tpu.memory_space<vmem>>) attributes {dimension_semantics = [#tpu.dimension_semantics<parallel>], iteration_bounds = array<i64: 1>, scalar_prefetch = 0 : i64, scratch_operands = 0 : i64, tpu.core_type = #tpu.core_type<tc>, window_params = [{transform_indices = @transform_0, window_bounds = array<i64: 8, 16>}, {transform_indices = @transform_1, window_bounds = array<i64: 8, 1>}, {transform_indices = @transform_2, window_bounds = array<i64: 1, 1, 1>}]} {
    %c0 = arith.constant 0 : index
    %c0_0 = arith.constant 0 : index
    %0 = vector.load %arg2[%c0, %c0_0] : memref<8x1xi32, #tpu.memory_space<vmem>>, vector<8x1xi32>
    %c0_1 = arith.constant 0 : index
    %c0_2 = arith.constant 0 : index
    %1 = vector.load %arg1[%c0_1, %c0_2] : memref<8x16xf32, #tpu.memory_space<vmem>>, vector<8x16xf32>
    %cst = arith.constant dense<0xFF800000> : vector<8xf32>
    %2 = vector.multi_reduction <maximumf>, %1, %cst [1] : vector<8x16xf32> to vector<8xf32>
    %3 = vector.shape_cast %2 : vector<8xf32> to vector<8x1xf32>
    %4 = vector.broadcast %3 : vector<8x1xf32> to vector<8x16xf32>
    %5 = arith.subf %1, %4 : vector<8x16xf32>
    %6 = math.exp %5 : vector<8x16xf32>
    %cst_3 = arith.constant dense<0.000000e+00> : vector<8xf32>
    %7 = vector.multi_reduction <add>, %6, %cst_3 [1] : vector<8x16xf32> to vector<8xf32>
    %8 = vector.shape_cast %7 : vector<8xf32> to vector<8x1xf32>
    %cst_4 = arith.constant dense<0.000000e+00> : vector<8xf32>
    %9 = vector.multi_reduction <add>, %1, %cst_4 [1] : vector<8x16xf32> to vector<8xf32>
    %10 = vector.shape_cast %9 : vector<8xf32> to vector<8x1xf32>
    %11 = tpu.iota {dimensions = array<i32: 1>} : vector<8x16xi32>
    %12 = vector.broadcast %0 : vector<8x1xi32> to vector<8x16xi32>
    %13 = arith.cmpi eq, %11, %12 : vector<8x16xi32>
    %cst_5 = arith.constant 0.000000e+00 : f32
    %14 = vector.broadcast %cst_5 : f32 to vector<8x16xf32>
    %15 = arith.select %13, %1, %14 : vector<8x16xi1>, vector<8x16xf32>
    %cst_6 = arith.constant dense<0.000000e+00> : vector<8xf32>
    %16 = vector.multi_reduction <add>, %15, %cst_6 [1] : vector<8x16xf32> to vector<8xf32>
    %17 = vector.shape_cast %16 : vector<8xf32> to vector<8x1xf32>
    %18 = math.log %8 : vector<8x1xf32>
    %19 = arith.subf %17, %3 : vector<8x1xf32>
    %cst_7 = arith.constant 1.600000e+01 : f32
    %20 = vector.broadcast %cst_7 : f32 to vector<8x1xf32>
    %21 = arith.mulf %20, %3 : vector<8x1xf32>
    %22 = arith.subf %10, %21 : vector<8x1xf32>
    %23 = arith.subf %19, %18 : vector<8x1xf32>
    %cst_8 = arith.constant 0.893333315 : f32
    %24 = vector.broadcast %cst_8 : f32 to vector<8x1xf32>
    %25 = arith.mulf %24, %23 : vector<8x1xf32>
    %cst_9 = arith.constant 1.600000e+01 : f32
    %26 = vector.broadcast %cst_9 : f32 to vector<8x1xf32>
    %27 = arith.mulf %26, %18 : vector<8x1xf32>
    %28 = arith.subf %22, %27 : vector<8x1xf32>
    %cst_10 = arith.constant 0.00666666683 : f32
    %29 = vector.broadcast %cst_10 : f32 to vector<8x1xf32>
    %30 = arith.mulf %29, %28 : vector<8x1xf32>
    %31 = arith.addf %25, %30 : vector<8x1xf32>
    %cst_11 = arith.constant 0.000000e+00 : f32
    %32 = vector.broadcast %cst_11 : f32 to vector<8x1xf32>
    %33 = arith.subf %32, %31 : vector<8x1xf32>
    %cst_12 = arith.constant dense<0.000000e+00> : vector<1xf32>
    %34 = vector.multi_reduction <add>, %33, %cst_12 [0] : vector<8x1xf32> to vector<1xf32>
    %35 = vector.shape_cast %34 : vector<1xf32> to vector<1x1xf32>
    %36 = vector.shape_cast %35 : vector<1x1xf32> to vector<1x1x1xf32>
    %c0_13 = arith.constant 0 : index
    %c0_14 = arith.constant 0 : index
    %c0_15 = arith.constant 0 : index
    %37 = vector.load %arg3[%c0_13, %c0_14, %c0_15] : memref<1x1x1xf32, #tpu.memory_space<vmem>>, vector<1x1x1xf32>
    tpu.vector_store %arg3[%c0_13, %c0_14, %c0_15], %36 {strides = array<i32>} : memref<1x1x1xf32, #tpu.memory_space<vmem>>, vector<1x1x1xf32>,
    return
  }
  func.func @transform_0(%arg0: i32) -> (i32, i32) {
    %c0_i32 = arith.constant 0 : i32
    %c0_i32_0 = arith.constant 0 : i32
    return %arg0, %c0_i32 : i32, i32
  }
  func.func @transform_1(%arg0: i32) -> (i32, i32) {
    %c0_i32 = arith.constant 0 : i32
    %c0_i32_0 = arith.constant 0 : i32
    return %arg0, %c0_i32 : i32, i32
  }
  func.func @transform_2(%arg0: i32) -> (i32, i32, i32) {
    %c0_i32 = arith.constant 0 : i32
    %c0_i32_0 = arith.constant 0 : i32
    %c0_i32_1 = arith.constant 0 : i32
    return %arg0, %c0_i32, %c0_i32_0 : i32, i32, i32
  }
}

</mosaic_0001>

<bundles_post_ra>
// kernel: tpu_custom_call.1
= control target key start
LH: loop header
LB: loop body
LE: loop exit
PB: predicated region body
PF: predicated region fallthrough
CT: control target
= control target key end

     0   :  { %vm14_vm0 = vcmask 130048   ;;  %s136_s0 = inlined_call_operand.vmem [shape: f32[8,16], index: 0, kind: input, shape index: {}]   ;;  %s137_s1 = inlined_call_operand.vmem [shape: s32[8,1], index: 1, kind: input, shape index: {}]   ;;  %s138_s2 = inlined_call_operand.hbm [shape: f32[1,1,1], index: 2, kind: output, shape index: {}]  }
   0x1   :  { %v13_v0 = vld [vmem:[%s136_s0] sm:$0xff] }
   0x2   :  { %7 = vsyncpa [#allocation3], 0  ;;  %v15_v1 = vsel %vm14_vm0, %v13_v0, -inf  ;;  %v106_v2 = vmov 0   ;;  %v12_v3 = vld [vmem:[%s137_s1] sm:$0xff]  ;;  %v27_v9 = vlaneseq  ;;  %v24_v11 = vsel %vm14_vm0, %v13_v0, 0.0 }
   0x3   :  { %75 = vset.pattern.permute.xlu0 %v106_v2  ;;  %s107_s0 = smov [#allocation2]   ;;  %s64_s15 = sshll.u32 %s138_s2, 4  ;;  %vm55_vm2 = vcmask 0   ;;  %s65_s15 = int_to_ptr.hbm [resolvable:$true] %s64_s15 }
   0x4   :  { %16 = vmax.xlane.f32.xlu0 %v15_v1  ;;  %v28_v10 = vand.u32 127, %v27_v9  ;;  %s62_s1 = sshll.u32 %s107_s0, 4  ;;  %s63_s1 = int_to_ptr.vmem [resolvable:$true] %s62_s1 }
  0x18   :  { %30 = vperm.xlu0 %75, %v12_v3  }
  0x77   :  { %v17_v4 = vpop.xlane.xlu0 %16 }
  0x78   :  { %v18_v5 = vsub.f32 %v13_v0, %v17_v4  ;;  %v40_v17 = vmul.f32 16.0, %v17_v4 }
  0x7a   :  { %v19_v6 = vmul.f32 1.442695, %v18_v5 }
  0x7c   :  { %76 = vpow2.f32 %v19_v6 }
  0x82   :  { %v77_v7 = vpop.eup %76 }
  0x83   :  { %v21_v8 = vsel %vm14_vm0, %v77_v7, 0.0 }
  0x84   :  { %22 = vadd.xlane.f32.xlu1 %v21_v8 }
  0x8a   :  { %v31_v12 = vpop.permute.xlu0 %30 }
  0x8b   :  { %vm32_vm1 = vcmp.eq.s32.totalorder %v28_v10, %v31_v12 }
  0x8c   :  { %25 = vadd.xlane.f32.xlu1 %v24_v11  ;;  %v33_v13 = vsel %vm32_vm1, %v13_v0, 0.0 }
  0x8d   :  { %v34_v14 = vsel %vm14_vm0, %v33_v13, 0.0 }
  0x8e   :  { %35 = vadd.xlane.f32.xlu2 %v34_v14 }
  0xf7   :  { %v23_v15 = vpop.xlane.xlu1 %22 }
  0xf8   :  { %78 = vlog2.f32 %v23_v15 }
  0xfe   :  { %v79_v16 = vpop.eup %78 }
  0xff   :  { %v38_v18 = vmul.f32 0.6931472, %v79_v16  ;;  %v26_v19 = vpop.xlane.xlu1 %25 }
 0x100   :  { %v41_v20 = vsub.f32 %v26_v19, %v40_v17 }
 0x101   :  { %v44_v21 = vmul.f32 16.0, %v38_v18  ;;  %v36_v22 = vpop.xlane.xlu2 %35 }
 0x102   :  { %v39_v23 = vsub.f32 %v36_v22, %v17_v4 }
 0x103   :  { %v45_v24 = vsub.f32 %v41_v20, %v44_v21 }
 0x104   :  { %v42_v25 = vsub.f32 %v39_v23, %v38_v18 }
 0x105   :  { %v46_v26 = vmul.f32 0.006666667, %v45_v24 }
 0x106   :  { %v43_v27 = vmul.f32 0.8933333, %v42_v25 }
 0x108   :  { %v47_v28 = vadd.f32 %v46_v26, %v43_v27 }
 0x10a   :  { %v48_v29 = vsub.f32 0.0, %v47_v28 }
 0x10c   :  { %v49_v30 = vrot.slane %v48_v29, 4 }
 0x10e   :  { %v50_v31 = vadd.f32 %v49_v30, %v48_v29 }
 0x110   :  { %v51_v32 = vrot.slane %v50_v31, 2 }
 0x112   :  { %v52_v33 = vadd.f32 %v51_v32, %v50_v31 }
 0x114   :  { %v53_v34 = vrot.slane %v52_v33, 1 }
 0x116   :  { %v54_v35 = vadd.f32 %v53_v34, %v52_v33 }
 0x118   :  { %56 = vst.msk [vmem:[#allocation2] sm:$0x1] %vm55_vm2, %v54_v35 }
 0x119   :  { %67 = dma.vmem_to_hbm [thread:$0]  %s63_s1, 16, %s65_s15, [#allocation3]  }
 0x11a   :  { %104 = dma.done.wait [#allocation3], 16  }
 0x11b   :  { %105 = vsyncadd [#allocation3], 4294967280 }
 0x11c   :  { %72 = vsyncpa [#allocation3], 1 }

</bundles_post_ra>
